<compile_context>
chip_gen: v6e
topology: v6e:2x2x1
jax: 0.10.0
libtpu: 0.0.40
codegen_flags: <defaults>
</compile_context>

<pallas_src>
import math
import functools

import jax
import jax.numpy as jnp
from jax.experimental import pallas as pl
from jax.experimental.pallas import tpu as pltpu


def _round_up(x, m):
    return ((x + m - 1) // m) * m


# ----------------------------------------------------------------------------
# Fused MLP kernel: one (lane-dense) M-tile per grid step.
# ----------------------------------------------------------------------------
def _mlp_kernel(x_ref, w1_ref, b1_ref, w2_ref, b2_ref, o_ref):
    # x: (tm, P*K)  W1_bd: (P*K, P*H)  b1: (1, P*H)  W2_bd: (P*H, P*K)  b2: (1, P*K)
    w1 = w1_ref[...]
    h = jnp.dot(x_ref[...].astype(w1.dtype), w1,
                preferred_element_type=jnp.float32)
    h = jnp.maximum(h + b1_ref[...], 0.0)          # bias + ReLU (f32)
    # TODO(synk): training-mode Dropout(p=0.1) not implemented; forward matches
    # the module in eval mode (dropout = identity).
    w2 = w2_ref[...]
    y = jnp.dot(h.astype(w2.dtype), w2,
                preferred_element_type=jnp.float32)
    o_ref[...] = (y + b2_ref[...]).astype(o_ref.dtype)


def mlp_pallas(x, params, *, max_tile_rows=4096, compute_dtype=jnp.float32):
    """Fused MLP forward.

    x: (..., key_dim) float32.
    params (PyTorch Linear layout, weight = (out_features, in_features)):
      W1: (num_neurons, key_dim), b1: (num_neurons,),
      W2: (key_dim, num_neurons), b2: (key_dim,).
    """
    orig_shape = x.shape
    K = orig_shape[-1]
    H = params["W1"].shape[0]

    # Lane packing factor: pack P logical rows into one 128-lane row.
    P = (128 // K) if (K < 128 and 128 % K == 0) else 1
    PK, PH = P * K, P * H

    x2d = x.reshape(-1, K)
    M = x2d.shape[0]

    # Pad logical rows to a multiple of P, then pack lane-dense.
    row_pad = (-M) % P
    if row_pad:
        x2d = jnp.pad(x2d, ((0, row_pad), (0, 0)))
    Mp = (M + row_pad) // P
    xp = x2d.reshape(Mp, PK)

    # Adaptive tile over packed rows: biggest tile within budget, minimal pad.
    if Mp <= max_tile_rows:
        tm = Mp                              # single full-extent block (always legal)
        grid_m = 1
        mp_pad = 0
    else:
        n_tiles = pl.cdiv(Mp, max_tile_rows)
        tm = _round_up(pl.cdiv(Mp, n_tiles), 8)   # sublane granularity
        grid_m = pl.cdiv(Mp, tm)
        mp_pad = grid_m * tm - Mp
        if mp_pad:
            xp = jnp.pad(xp, ((0, mp_pad), (0, 0)))

    # Host-side block-diagonal weights (tiny: ~P*K*P*H floats each).
    w1t = params["W1"].T.astype(compute_dtype)         # (K, H)
    w2t = params["W2"].T.astype(compute_dtype)         # (H, K)
    eye = jnp.eye(P, dtype=compute_dtype)
    w1_bd = jnp.kron(eye, w1t)                         # (PK, PH)
    w2_bd = jnp.kron(eye, w2t)                         # (PH, PK)
    b1_bd = jnp.tile(params["b1"].astype(jnp.float32), P).reshape(1, PH)
    b2_bd = jnp.tile(params["b2"].astype(jnp.float32), P).reshape(1, PK)

    # VMEM budget: x + out tiles double-buffered, hidden activation, weights.
    elt_io = jnp.dtype(x.dtype).itemsize
    elt_w = jnp.dtype(compute_dtype).itemsize
    vmem_needed = (2 * 2 * tm * PK * elt_io            # x + out, 2 buffers each
                   + tm * PH * 4                       # hidden (f32)
                   + 2 * PK * PH * elt_w               # resident weights
                   + (PH + PK) * 4)                    # biases
    vmem_limit = min(max(32 * 1024 * 1024, 2 * int(vmem_needed)),
                     64 * 1024 * 1024)                 # stays valid on v7x (64 MiB/TC)

    out = pl.pallas_call(
        _mlp_kernel,
        out_shape=jax.ShapeDtypeStruct((grid_m * tm, PK), x.dtype),
        grid=(grid_m,),
        in_specs=[
            pl.BlockSpec((tm, PK), lambda i: (i, 0)),   # x tile (pipelined over M)
            pl.BlockSpec((PK, PH), lambda i: (0, 0)),   # W1_bd (VMEM-resident)
            pl.BlockSpec((1, PH), lambda i: (0, 0)),    # b1
            pl.BlockSpec((PH, PK), lambda i: (0, 0)),   # W2_bd (VMEM-resident)
            pl.BlockSpec((1, PK), lambda i: (0, 0)),    # b2
        ],
        out_specs=pl.BlockSpec((tm, PK), lambda i: (i, 0)),
        compiler_params=pltpu.CompilerParams(
            dimension_semantics=("parallel",),
            vmem_limit_bytes=vmem_limit,
        ),
    )(xp, w1_bd, b1_bd, w2_bd, b2_bd)

    # Unpack: drop padded packed rows, unpack lanes, drop padded logical rows.
    out = out[:Mp].reshape(Mp * P, K)[:M]
    return out.reshape(orig_shape[:-1] + (K,))


# ----------------------------------------------------------------------------
# Pure-JAX reference (eval mode: dropout = identity)
# ----------------------------------------------------------------------------
def reference_mlp(x, params):
    h = x @ params["W1"].T + params["b1"]
    h = jnp.maximum(h, 0.0)
    return h @ params["W2"].T + params["b2"]


if __name__ == "__main__":
    # Config mirrors the torch module: Linear(key_dim, 32) -> ReLU -> Linear(32, key_dim)
    key_dim = 16
    num_neurons = 32
    batch, seq = 2, 8

    key = jax.random.PRNGKey(0)
    kx, k1, k2, k3, k4 = jax.random.split(key, 5)

    def xavier_uniform(k, out_dim, in_dim):
        bound = math.sqrt(6.0 / (in_dim + out_dim))
        return jax.random.uniform(k, (out_dim, in_dim), jnp.float32, -bound, bound)

    params = {
        "W1": xavier_uniform(k1, num_neurons, key_dim),
        "b1": 1e-6 * jax.random.normal(k2, (num_neurons,), jnp.float32),
        "W2": xavier_uniform(k3, key_dim, num_neurons),
        "b2": 1e-6 * jax.random.normal(k4, (key_dim,), jnp.float32),
    }

    x = jax.random.normal(kx, (batch, seq, key_dim), jnp.float32)

    # Small-shape run (single tile), f32 compute.
    out = jax.block_until_ready(mlp_pallas(x, params))
    ref = reference_mlp(x, params)
    assert out.shape == (batch, seq, key_dim)
    assert jnp.allclose(out, ref, atol=1e-4, rtol=1e-4), "mismatch vs reference (f32)"

    # Multi-tile run (forces several grid steps + row padding) with f32 compute.
    x_big = jax.random.normal(jax.random.PRNGKey(1), (4, 200, key_dim), jnp.float32)
    out_big = jax.block_until_ready(
        mlp_pallas(x_big, params, max_tile_rows=32))
    ref_big = reference_mlp(x_big, params)
    assert out_big.shape == x_big.shape
    assert jnp.allclose(out_big, ref_big, atol=1e-4, rtol=1e-4), "mismatch (multi-tile)"

    # Optional bf16 MXU-operand path (weights pre-cast host-side; f32 accumulate).
    out_bf16 = jax.block_until_ready(
        mlp_pallas(x_big, params, max_tile_rows=32, compute_dtype=jnp.bfloat16))
    assert jnp.allclose(out_bf16, ref_big, atol=5e-2, rtol=5e-2), "mismatch (bf16)"

    print("KERNEL_OK")
</pallas_src>

<mosaic_0001>
module attributes {stable_mosaic.version = 11 : i64} {
  func.func @_mlp_kernel(%arg0: i32, %arg1: memref<2x128xf32, #tpu.memory_space<vmem>>, %arg2: memref<128x256xf32, #tpu.memory_space<vmem>>, %arg3: memref<1x256xf32, #tpu.memory_space<vmem>>, %arg4: memref<256x128xf32, #tpu.memory_space<vmem>>, %arg5: memref<1x128xf32, #tpu.memory_space<vmem>>, %arg6: memref<2x128xf32, #tpu.memory_space<vmem>>) attributes {dimension_semantics = [#tpu.dimension_semantics<parallel>], iteration_bounds = array<i64: 1>, scalar_prefetch = 0 : i64, scratch_operands = 0 : i64, tpu.core_type = #tpu.core_type<tc>, window_params = [{transform_indices = @transform_0, window_bounds = array<i64: 2, 128>}, {pipeline_mode = #tpu.pipeline_mode<synchronous>, transform_indices = @transform_1, window_bounds = array<i64: 128, 256>}, {pipeline_mode = #tpu.pipeline_mode<synchronous>, transform_indices = @transform_2, window_bounds = array<i64: 1, 256>}, {pipeline_mode = #tpu.pipeline_mode<synchronous>, transform_indices = @transform_3, window_bounds = array<i64: 256, 128>}, {pipeline_mode = #tpu.pipeline_mode<synchronous>, transform_indices = @transform_4, window_bounds = array<i64: 1, 128>}, {transform_indices = @transform_5, window_bounds = array<i64: 2, 128>}]} {
    %c0 = arith.constant 0 : index
    %c0_0 = arith.constant 0 : index
    %0 = vector.load %arg2[%c0, %c0_0] : memref<128x256xf32, #tpu.memory_space<vmem>>, vector<128x256xf32>
    %c0_1 = arith.constant 0 : index
    %c0_2 = arith.constant 0 : index
    %1 = vector.load %arg1[%c0_1, %c0_2] : memref<2x128xf32, #tpu.memory_space<vmem>>, vector<2x128xf32>
    %cst = arith.constant dense<0.000000e+00> : vector<2x256xf32>
    %2 = tpu.matmul %1, %0, %cst {dimension_numbers = #tpu.dot_dimension_numbers<[1], [0], [0], [1], [0, 0, 1, 1], [], []>} : vector<2x128xf32>, vector<128x256xf32>, vector<2x256xf32> -> vector<2x256xf32>
    %c0_3 = arith.constant 0 : index
    %c0_4 = arith.constant 0 : index
    %3 = vector.load %arg3[%c0_3, %c0_4] : memref<1x256xf32, #tpu.memory_space<vmem>>, vector<1x256xf32>
    %4 = vector.broadcast %3 : vector<1x256xf32> to vector<2x256xf32>
    %5 = arith.addf %2, %4 : vector<2x256xf32>
    %cst_5 = arith.constant 0.000000e+00 : f32
    %6 = vector.broadcast %cst_5 : f32 to vector<2x256xf32>
    %7 = arith.maximumf %5, %6 : vector<2x256xf32>
    %c0_6 = arith.constant 0 : index
    %c0_7 = arith.constant 0 : index
    %8 = vector.load %arg4[%c0_6, %c0_7] : memref<256x128xf32, #tpu.memory_space<vmem>>, vector<256x128xf32>
    %cst_8 = arith.constant dense<0.000000e+00> : vector<2x128xf32>
    %9 = tpu.matmul %7, %8, %cst_8 {dimension_numbers = #tpu.dot_dimension_numbers<[1], [0], [0], [1], [0, 0, 1, 1], [], []>} : vector<2x256xf32>, vector<256x128xf32>, vector<2x128xf32> -> vector<2x128xf32>
    %c0_9 = arith.constant 0 : index
    %c0_10 = arith.constant 0 : index
    %10 = vector.load %arg5[%c0_9, %c0_10] : memref<1x128xf32, #tpu.memory_space<vmem>>, vector<1x128xf32>
    %11 = vector.broadcast %10 : vector<1x128xf32> to vector<2x128xf32>
    %12 = arith.addf %9, %11 : vector<2x128xf32>
    %c0_11 = arith.constant 0 : index
    %c0_12 = arith.constant 0 : index
    %13 = vector.load %arg6[%c0_11, %c0_12] : memref<2x128xf32, #tpu.memory_space<vmem>>, vector<2x128xf32>
    tpu.vector_store %arg6[%c0_11, %c0_12], %12 {strides = array<i32>} : memref<2x128xf32, #tpu.memory_space<vmem>>, vector<2x128xf32>,
    return
  }
  func.func @transform_0(%arg0: i32) -> (i32, i32) {
    %c0_i32 = arith.constant 0 : i32
    %c0_i32_0 = arith.constant 0 : i32
    return %arg0, %c0_i32 : i32, i32
  }
  func.func @transform_1(%arg0: i32) -> (i32, i32) {
    %c0_i32 = arith.constant 0 : i32
    %c0_i32_0 = arith.constant 0 : i32
    %c0_i32_1 = arith.constant 0 : i32
    return %c0_i32, %c0_i32_0 : i32, i32
  }
  func.func @transform_2(%arg0: i32) -> (i32, i32) {
    %c0_i32 = arith.constant 0 : i32
    %c0_i32_0 = arith.constant 0 : i32
    %c0_i32_1 = arith.constant 0 : i32
    return %c0_i32, %c0_i32_0 : i32, i32
  }
  func.func @transform_3(%arg0: i32) -> (i32, i32) {
    %c0_i32 = arith.constant 0 : i32
    %c0_i32_0 = arith.constant 0 : i32
    %c0_i32_1 = arith.constant 0 : i32
    return %c0_i32, %c0_i32_0 : i32, i32
  }
  func.func @transform_4(%arg0: i32) -> (i32, i32) {
    %c0_i32 = arith.constant 0 : i32
    %c0_i32_0 = arith.constant 0 : i32
    %c0_i32_1 = arith.constant 0 : i32
    return %c0_i32, %c0_i32_0 : i32, i32
  }
  func.func @transform_5(%arg0: i32) -> (i32, i32) {
    %c0_i32 = arith.constant 0 : i32
    %c0_i32_0 = arith.constant 0 : i32
    return %arg0, %c0_i32 : i32, i32
  }
}

</mosaic_0001>

<bundles_post_ra>
// kernel: tpu_custom_call.1
= control target key start
LH: loop header
LB: loop body
LE: loop exit
PB: predicated region body
PF: predicated region fallthrough
CT: control target
= control target key end

     0   :  { %10 = vsyncpa [#allocation3], 0  ;;  %s492_s0 = inlined_call_operand.hbm [shape: f32[2,128], index: 0, kind: input, shape index: {}]   ;;  %s493_s1 = inlined_call_operand.hbm [shape: f32[128,256], index: 1, kind: input, shape index: {}]   ;;  %s494_s2 = inlined_call_operand.vmem [shape: f32[1,256], index: 2, kind: input, shape index: {}]   ;;  %s495_s3 = inlined_call_operand.hbm [shape: f32[256,128], index: 3, kind: input, shape index: {}]   ;;  %s496_s4 = inlined_call_operand.vmem [shape: f32[1,128], index: 4, kind: input, shape index: {}]   ;;  %s497_s5 = inlined_call_operand.hbm [shape: f32[2,128], index: 5, kind: output, shape index: {}]  }
   0x1   :  { %11 = vsyncpa [#allocation6], 0 }
   0x2   :  { %12 = vsyncpa [#allocation4], 0  ;;  %s435_s18 = smov [#allocation5]  }
   0x3   :  { %s28_s19 = sshll.u32 %s435_s18, 4  ;;  %s29_s19 = int_to_ptr.vmem [resolvable:$true] %s28_s19 }
   0x4   :  { %s357_s20 = scalar_lea.vmem %s29_s19, 4096  ;;  %p362_p1 = scmp.lt.s32.totalorder %s29_s19, %s29_s19 }
   0x5   :  { %p358_p0 = scmp.ne.s32.totalorder %s29_s19, %s357_s20  ;;  %p363_p2 = scmp.lt.s32.totalorder %s357_s20, %s357_s20 }
   0x7   :  { %p364_p3 = por %p363_p2, %p362_p1 }
   0x9   :  { %p365_p4 = pnand %p364_p3, %p358_p0 }
   0xb   :  { %368 = shalt.err (!%p365_p4)
}
   0xc   :  { %s436_s21 = smov 256   ;;  %s437_s22 = smov 16  }
   0xd   :  { %34 = dma.hbm_to_vmem [thread:$0]  %s493_s1, 4096, %s29_s19, [#allocation6], %s436_s21, %s436_s21, %s437_s22  }
   0xe   :  { %s438_s25 = smov [#allocation2]   ;;  %s439_s27 = smov [#allocation7]  }
   0xf   :  { %s19_s26 = sshll.u32 %s438_s25, 4  ;;  %s42_s28 = sshll.u32 %s439_s27, 4  ;;  %s20_s26 = int_to_ptr.vmem [resolvable:$true] %s19_s26  ;;  %s43_s28 = int_to_ptr.vmem [resolvable:$true] %s42_s28 }
  0x10   :  { %s377_s29 = scalar_lea.vmem %s20_s26, 32  ;;  %p382_p6 = scmp.lt.s32.totalorder %s20_s26, %s20_s26 }
  0x11   :  { %p378_p5 = scmp.ne.s32.totalorder %s20_s26, %s377_s29  ;;  %p383_p7 = scmp.lt.s32.totalorder %s377_s29, %s377_s29 }
  0x13   :  { %p384_p8 = por %p383_p7, %p382_p6 }
  0x15   :  { %p385_p9 = pnand %p384_p8, %p378_p5 }
  0x17   :  { %388 = shalt.err (!%p385_p9)
}
  0x18   :  { %22 = dma.hbm_to_vmem [thread:$0]  %s492_s0, 32, %s20_s26, [#allocation3]  }
  0x19   :  { %s397_s7 = scalar_lea.vmem %s43_s28, 4096  ;;  %p402_p11 = scmp.lt.s32.totalorder %s43_s28, %s43_s28 }
  0x1a   :  { %p398_p10 = scmp.ne.s32.totalorder %s43_s28, %s397_s7  ;;  %p403_p12 = scmp.lt.s32.totalorder %s397_s7, %s397_s7 }
  0x1c   :  { %p404_p13 = por %p403_p12, %p402_p11 }
  0x1e   :  { %p405_p0 = pnand %p404_p13, %p398_p10 }
  0x20   :  { %408 = shalt.err (!%p405_p0)
}
  0x21   :  { %s440_s1 = smov 128   ;;  %s441_s8 = smov 8  }
  0x22   :  { %48 = dma.hbm_to_vmem [thread:$0]  %s495_s3, 4096, %s43_s28, [#allocation6], %s440_s1, %s440_s1, %s441_s8  }
  0x23   :  { %429 = dma.done.wait [#allocation3], 32  }
  0x24   :  { %430 = vsyncadd [#allocation3], 4294967264 }
  0x25   :  { %431 = dma.done.wait [#allocation6], 8192  }
  0x26   :  { %432 = vsyncadd [#allocation6], 4294959104  ;;  %v442_v0 = vmov 0.0   ;;  %v91_v1 = vld [vmem:[#allocation5 + $0xf8] sm:$0xff]  ;;  %v90_v2 = vld [vmem:[#allocation5 + $0xf0] sm:$0xff]  ;;  %s443_s13 = smov [#allocation8]  }
  0x27   :  { %169 = vmatprep.mubr.f32.mxu0 %v442_v0  ;;  %v89_v3 = vld [vmem:[#allocation5 + $0xe8] sm:$0xff]  ;;  %105 = vmatprep.subr.mxu0 %v91_v1  ;;  %v88_v4 = vld [vmem:[#allocation5 + $0xe0] sm:$0xff]  ;;  %v87_v5 = vld [vmem:[#allocation5 + $0xd8] sm:$0xff]  ;;  %s294_s14 = sshll.u32 %s443_s13, 4  ;;  %s295_s14 = int_to_ptr.vmem [resolvable:$true] %s294_s14 }
  0x28   :  { %106 = vmatpush1.msra.mxu0 %v90_v2  ;;  %v86_v6 = vld [vmem:[#allocation5 + $0xd0] sm:$0xff]  ;;  %v85_v7 = vld [vmem:[#allocation5 + $0xc8] sm:$0xff]  ;;  %v84_v8 = vld [vmem:[#allocation5 + $0xc0] sm:$0xff]  ;;  %v95_v2 = vlaneseq  ;;  %p414_p2 = scmp.lt.s32.totalorder %s295_s14, %s295_s14 }
  0x29   :  { %107 = vmatprep.subr.mxu0 %v89_v3  ;;  %v83_v9 = vld [vmem:[#allocation5 + $0xb8] sm:$0xff]  ;;  %v82_v10 = vld [vmem:[#allocation5 + $0xb0] sm:$0xff]  ;;  %v81_v11 = vld [vmem:[#allocation5 + $0xa8] sm:$0xff] }
  0x2a   :  { %108 = vmatpush1.msra.mxu0 %v88_v4  ;;  %v80_v12 = vld [vmem:[#allocation5 + $0xa0] sm:$0xff]  ;;  %v79_v13 = vld [vmem:[#allocation5 + $0x98] sm:$0xff]  ;;  %v78_v14 = vld [vmem:[#allocation5 + $0x90] sm:$0xff]  ;;  %v96_v3 = vshrl.u32 %v95_v2, 7 }
  0x2b   :  { %109 = vmatprep.subr.mxu0 %v87_v5  ;;  %v209_v15 = vld [vmem:[#allocation7 + $0xf8] sm:$0xff]  ;;  %v208_v17 = vld [vmem:[#allocation7 + $0xf0] sm:$0xff]  ;;  %v77_v18 = vld [vmem:[#allocation5 + $0x88] sm:$0xff] }
  0x2c   :  { %110 = vmatpush1.msra.mxu0 %v86_v6  ;;  %v193_v16 = vld [vmem:[#allocation7 + $0x78] sm:$0xff]  ;;  %305 = vmatprep.subr.mxu1 %v209_v15  ;;  %v192_v19 = vld [vmem:[#allocation7 + $0x70] sm:$0xff]  ;;  %v76_v20 = vld [vmem:[#allocation5 + $0x80] sm:$0xff]  ;;  %v97_v4 = vsub.s32 0, %v96_v3  ;;  %v101_v6 = vsub.s32 1, %v96_v3 }
  0x2d   :  { %111 = vmatprep.subr.mxu0 %v85_v7  ;;  %306 = vmatpush3.msra.mxu1 %v193_v16  ;;  %v207_v21 = vld [vmem:[#allocation7 + $0xe8] sm:$0xff]  ;;  %v75_v22 = vld [vmem:[#allocation5 + $0x78] sm:$0xff]  ;;  %v74_v24 = vld [vmem:[#allocation5 + $0x70] sm:$0xff] }
  0x2e   :  { %112 = vmatpush1.msra.mxu0 %v84_v8  ;;  %307 = vmatprep.subr.mxu1 %v208_v17  ;;  %v191_v23 = vld [vmem:[#allocation7 + $0x68] sm:$0xff]  ;;  %v206_v25 = vld [vmem:[#allocation7 + $0xe0] sm:$0xff]  ;;  %v205_v29 = vld [vmem:[#allocation7 + $0xd8] sm:$0xff] }
  0x2f   :  { %113 = vmatprep.subr.mxu0 %v83_v9  ;;  %308 = vmatpush3.msra.mxu1 %v192_v19  ;;  %v73_v26 = vld [vmem:[#allocation5 + $0x68] sm:$0xff]  ;;  %v190_v27 = vld [vmem:[#allocation7 + $0x60] sm:$0xff]  ;;  %v71_v30 = vld [vmem:[#allocation5 + $0x58] sm:$0xff] }
  0x30   :  { %114 = vmatpush1.msra.mxu0 %v82_v10  ;;  %309 = vmatprep.subr.mxu1 %v207_v21  ;;  %v72_v28 = vld [vmem:[#allocation5 + $0x60] sm:$0xff]  ;;  %v189_v31 = vld [vmem:[#allocation7 + $0x58] sm:$0xff]  ;;  %v70_v32 = vld [vmem:[#allocation5 + $0x50] sm:$0xff] }
  0x31   :  { %115 = vmatprep.subr.mxu0 %v81_v11  ;;  %310 = vmatpush3.msra.mxu1 %v191_v23  ;;  %v204_v33 = vld [vmem:[#allocation7 + $0xd0] sm:$0xff]  ;;  %v69_v34 = vld [vmem:[#allocation5 + $0x48] sm:$0xff]  ;;  %v68_v36 = vld [vmem:[#allocation5 + $0x40] sm:$0xff] }
  0x32   :  { %116 = vmatpush1.msra.mxu0 %v80_v12  ;;  %311 = vmatprep.subr.mxu1 %v206_v25  ;;  %v188_v35 = vld [vmem:[#allocation7 + $0x50] sm:$0xff]  ;;  %v203_v37 = vld [vmem:[#allocation7 + $0xc8] sm:$0xff]  ;;  %v67_v38 = vld [vmem:[#allocation5 + $0x38] sm:$0xff] }
  0x33   :  { %117 = vmatprep.subr.mxu0 %v79_v13  ;;  %312 = vmatpush3.msra.mxu1 %v190_v27  ;;  %v187_v39 = vld [vmem:[#allocation7 + $0x48] sm:$0xff]  ;;  %v66_v40 = vld [vmem:[#allocation5 + $0x30] sm:$0xff]  ;;  %v202_v41 = vld [vmem:[#allocation7 + $0xc0] sm:$0xff] }
  0x34   :  { %118 = vmatpush1.msra.mxu0 %v78_v14  ;;  %313 = vmatprep.subr.mxu1 %v205_v29  ;;  %v65_v42 = vld [vmem:[#allocation5 + $0x28] sm:$0xff]  ;;  %v186_v43 = vld [vmem:[#allocation7 + $0x40] sm:$0xff]  ;;  %v201_v45 = vld [vmem:[#allocation7 + $0xb8] sm:$0xff] }
  0x35   :  { %119 = vmatprep.subr.mxu0 %v77_v18  ;;  %314 = vmatpush3.msra.mxu1 %v189_v31  ;;  %v64_v44 = vld [vmem:[#allocation5 + $0x20] sm:$0xff]  ;;  %v63_v46 = vld [vmem:[#allocation5 + $0x18] sm:$0xff]  ;;  %v62_v48 = vld [vmem:[#allocation5 + $0x10] sm:$0xff] }
  0x36   :  { %120 = vmatpush1.msra.mxu0 %v76_v20  ;;  %315 = vmatprep.subr.mxu1 %v204_v33  ;;  %v185_v47 = vld [vmem:[#allocation7 + $0x38] sm:$0xff]  ;;  %v200_v49 = vld [vmem:[#allocation7 + $0xb0] sm:$0xff]  ;;  %v61_v50 = vld [vmem:[#allocation5 + $0x8] sm:$0xff] }
  0x37   :  { %121 = vmatprep.subr.mxu0 %v75_v22  ;;  %316 = vmatpush3.msra.mxu1 %v188_v35  ;;  %v184_v51 = vld [vmem:[#allocation7 + $0x30] sm:$0xff]  ;;  %v60_v52 = vld [vmem:[#allocation5] sm:$0xff]  ;;  %v199_v53 = vld [vmem:[#allocation7 + $0xa8] sm:$0xff] }
  0x38   :  { %122 = vmatpush1.msra.mxu0 %v74_v24  ;;  %317 = vmatprep.subr.mxu1 %v203_v37  ;;  %v92_v54 = vld [vmem:[#allocation2] sm:$0x3]  ;;  %v183_v55 = vld [vmem:[#allocation7 + $0x28] sm:$0xff]  ;;  %v198_v56 = vld [vmem:[#allocation7 + $0xa0] sm:$0xff] }
  0x39   :  { %123 = vmatprep.subr.mxu0 %v73_v26  ;;  %318 = vmatpush3.msra.mxu1 %v187_v39  ;;  %v182_v57 = vld [vmem:[#allocation7 + $0x20] sm:$0xff]  ;;  %v197_v58 = vld [vmem:[#allocation7 + $0x98] sm:$0xff]  ;;  %v196_v60 = vld [vmem:[#allocation7 + $0x90] sm:$0xff] }
  0x3a   :  { %124 = vmatpush1.msra.mxu0 %v72_v28  ;;  %319 = vmatprep.subr.mxu1 %v202_v41  ;;  %v181_v59 = vld [vmem:[#allocation7 + $0x18] sm:$0xff]  ;;  %v180_v61 = vld [vmem:[#allocation7 + $0x10] sm:$0xff]  ;;  %v195_v62 = vld [vmem:[#allocation7 + $0x88] sm:$0xff] }
  0x3b   :  { %125 = vmatprep.subr.mxu0 %v71_v30  ;;  %320 = vmatpush3.msra.mxu1 %v186_v43  ;;  %v179_v63 = vld [vmem:[#allocation7 + $0x8] sm:$0xff]  ;;  %v194_v0 = vld [vmem:[#allocation7 + $0x80] sm:$0xff]  ;;  %v93_v5 = vld [vmem:[%s494_s2] sm:$0x3]  ;;  %s409_s2 = scalar_lea.vmem %s295_s14, 32 }
  0x3c   :  { %126 = vmatpush1.msra.mxu0 %v70_v32  ;;  %321 = vmatprep.subr.mxu1 %v201_v45  ;;  %v178_v1 = vld [vmem:[#allocation7] sm:$0xff]  ;;  %v98_v7 = vrot.slane %v93_v5, %v97_v4  ;;  %v102_v8 = vrot.slane %v93_v5, %v101_v6  ;;  %v304_v16 = vld [vmem:[%s496_s4] ss:$0 sm:$0xff]  ;;  %p410_p1 = scmp.ne.s32.totalorder %s295_s14, %s409_s2  ;;  %p415_p3 = scmp.lt.s32.totalorder %s409_s2, %s409_s2 }
  0x3d   :  { %127 = vmatprep.subr.mxu0 %v69_v34  ;;  %322 = vmatpush3.msra.mxu1 %v185_v47 }
  0x3e   :  { %128 = vmatpush1.msra.mxu0 %v68_v36  ;;  %323 = vmatprep.subr.mxu1 %v200_v49  ;;  %p416_p4 = por %p415_p3, %p414_p2 }
  0x3f   :  { %129 = vmatprep.subr.mxu0 %v67_v38  ;;  %324 = vmatpush3.msra.mxu1 %v184_v51 }
  0x40   :  { %130 = vmatpush1.msra.mxu0 %v66_v40  ;;  %325 = vmatprep.subr.mxu1 %v199_v53  ;;  %p417_p5 = pnand %p416_p4, %p410_p1 }
  0x41   :  { %131 = vmatprep.subr.mxu0 %v65_v42  ;;  %326 = vmatpush3.msra.mxu1 %v183_v55 }
  0x42   :  { %132 = vmatpush1.msra.mxu0 %v64_v44  ;;  %327 = vmatprep.subr.mxu1 %v198_v56 }
  0x43   :  { %133 = vmatprep.subr.mxu0 %v63_v46  ;;  %328 = vmatpush3.msra.mxu1 %v182_v57 }
  0x44   :  { %134 = vmatpush1.msra.mxu0 %v62_v48  ;;  %329 = vmatprep.subr.mxu1 %v197_v58 }
  0x45   :  { %135 = vmatprep.subr.mxu0 %v61_v50  ;;  %330 = vmatpush3.msra.mxu1 %v181_v59 }
  0x46   :  { %136 = vmatpush1.msra.mxu0 %v60_v52  ;;  %331 = vmatprep.subr.mxu1 %v196_v60 }
  0x47   :  { %170 = vmatmul.mubr.f32.vlgmr.msra.gmra.mxu0 %v92_v54  ;;  %332 = vmatpush3.msra.mxu1 %v180_v61 }
  0x48   :  { %333 = vmatprep.subr.mxu1 %v195_v62 }
  0x49   :  { %334 = vmatpush3.msra.mxu1 %v179_v63 }
  0x4a   :  { %335 = vmatprep.subr.mxu1 %v194_v0 }
  0x4b   :  { %336 = vmatpush3.msra.mxu1 %v178_v1 }
 0x107   :  { %v171_v9 = vpop.f32.mrf.mxu0 }
 0x108   :  { %v172_v10 = vadd.f32 %v171_v9, %v98_v7 }
 0x109   :  { %v173_v11 = vpop.f32.mrf.mxu0 }
 0x10a   :  { %v174_v12 = vadd.f32 %v173_v11, %v102_v8  ;;  %v176_v14 = vmax.f32 %v172_v10, 0.0 }
 0x10c   :  { %v177_v13 = vmax.f32 %v174_v12, 0.0 }
 0x10e   :  { %281 = vmatprep.mubr.f32.mxu1 %v177_v13 }
 0x10f   :  { %282 = vmatmul.mubr.f32.vlgmr.msra.gmra.mxu1 %v176_v14 }
 0x1cf   :  { %v337_v15 = vpop.f32.mrf.mxu1 }
 0x1d1   :  { %v338_v17 = vpop.f32.mrf.mxu1 }
 0x1d2   :  { %v339_v18 = vadd.f32 %v338_v17, %v337_v15 }
 0x1d4   :  { %v284_v19 = vadd.f32 %v339_v18, %v304_v16 }
 0x1d6   :  { %287 = vst [vmem:[#allocation8] sm:$0x3] %v284_v19 }
 0x1d7   :  { %420 = shalt.err (!%p417_p5)
}
 0x1d8   :  { %297 = dma.vmem_to_hbm [thread:$0]  %s295_s14, 32, %s497_s5, [#allocation4]  }
 0x1d9   :  { %433 = dma.done.wait [#allocation4], 32  }
 0x1da   :  { %434 = vsyncadd [#allocation4], 4294967264 }
 0x1db   :  { %301 = vsyncpa [#allocation3], 1 }
 0x1dc   :  { %302 = vsyncpa [#allocation6], 1 }
 0x1dd   :  { %303 = vsyncpa [#allocation4], 1 }

</bundles_post_ra>
